<compile_context>
chip_gen: v6e
topology: v6e:2x2x1
jax: 0.10.0
libtpu: 0.0.40
codegen_flags: <defaults>
</compile_context>

<pallas_src>
import functools

import jax
import jax.numpy as jnp
from jax.experimental import pallas as pl
from jax.experimental.pallas import tpu as pltpu


_INV_SQRT2 = 0.7071067811865476
_SQRT_2_OVER_PI = 0.7978845608028654


def _gelu(h, approximate):
    if approximate:
        # tanh approximation -> EUP slot (nearly free next to MXU/VPU work).
        return 0.5 * h * (1.0 + jnp.tanh(_SQRT_2_OVER_PI * (h + 0.044715 * h * h * h)))
    # Exact erf formulation -- matches torch.nn.GELU() default.
    return 0.5 * h * (1.0 + jax.lax.erf(h * _INV_SQRT2))


def _mlp_resident_kernel(x_ref, w1_ref, b1_ref, w2_ref, b2_ref, o_ref, *, approximate):
    """Weight-resident fast path. grid = (M_tiles,). W1/W2/b1/b2 constant blocks."""
    h = jnp.dot(x_ref[...], w1_ref[...], preferred_element_type=jnp.float32)
    h = h + b1_ref[...].astype(jnp.float32)
    h = _gelu(h, approximate)
    out = jnp.dot(h.astype(w2_ref.dtype), w2_ref[...], preferred_element_type=jnp.float32)
    o_ref[...] = (out + b2_ref[...].astype(jnp.float32)).astype(o_ref.dtype)


def _mlp_stream_kernel(x_ref, w1_ref, b1_ref, w2_ref, b2_ref, o_ref, *scratch, approximate):
    """Hidden-streaming fallback. grid = (M_tiles, H_tiles); hidden axis is a reduction."""
    k = pl.program_id(1)
    # When the output is f32 we accumulate directly into the (k-resident) output block.
    acc = scratch[0] if scratch else o_ref

    @pl.when(k == 0)
    def _():
        acc[...] = jnp.zeros_like(acc)

    h = jnp.dot(x_ref[...], w1_ref[...], preferred_element_type=jnp.float32)
    # b1 is fully resident; pick this chunk's (1, th) slice (dynamic leading index).
    h = h + b1_ref[k].astype(jnp.float32)
    h = _gelu(h, approximate)
    acc[...] += jnp.dot(h.astype(w2_ref.dtype), w2_ref[...],
                        preferred_element_type=jnp.float32)

    @pl.when(k == pl.num_programs(1) - 1)
    def _():
        o_ref[...] = (acc[...] + b2_ref[...].astype(jnp.float32)).astype(o_ref.dtype)


def _round_up(x, m):
    return ((x + m - 1) // m) * m


def _vmem_capacity_bytes():
    try:
        return int(pltpu.get_tpu_info().vmem_capacity_bytes)
    except Exception:
        return 64 * 1024 * 1024  # conservative fallback (v7x per-TensorCore size)


def _pick_hidden_tile(c_hidden, tile_h):
    """Largest multiple-of-128 divisor of c_hidden not exceeding tile_h (None if none)."""
    t = max(128, (min(tile_h, c_hidden) // 128) * 128)
    while t >= 128:
        if c_hidden % t == 0:
            return t
        t -= 128
    return None


@functools.partial(
    jax.jit,
    static_argnames=("tile_m", "tile_h", "compute_dtype", "gelu_approximate",
                     "force_hidden_streaming"),
)
def mlp_forward(x, w1, b1, w2, b2, *, tile_m=256, tile_h=512,
                compute_dtype=None, gelu_approximate=False,
                force_hidden_streaming=False):
    """x: (B, N, C_in) -> (B, N, C_out). fc1 + GELU + fc2 fused in one Pallas kernel.

    compute_dtype: e.g. jnp.bfloat16 to run the MXU in bf16 with f32 accumulation
                   (recommended for perf); None keeps the input dtype (bit-matches
                   the f32 torch reference).
    gelu_approximate: True -> tanh GELU on the EUP; False -> exact erf (torch default).
    """
    B, N, C_in = x.shape
    C_hidden = w1.shape[1]
    C_out = w2.shape[1]
    out_dtype = x.dtype
    out_itemsize = jnp.dtype(out_dtype).itemsize

    M = B * N
    x2d = x.reshape(M, C_in)

    # Optional bf16 operands (f32 accumulation preserved inside the kernel).
    if compute_dtype is not None:
        x2d = x2d.astype(compute_dtype)
        w1 = w1.astype(compute_dtype)
        w2 = w2.astype(compute_dtype)
    op_itemsize = jnp.dtype(w1.dtype).itemsize

    # Per-generation VMEM budgets (v5e/v6e: 128 MiB -> ~105 MiB limit; v7x: 64 MiB/TC -> ~52 MiB).
    vmem_cap = _vmem_capacity_bytes()
    vmem_limit = int(vmem_cap * 0.82)
    tile_budget = int(vmem_cap * 0.65)  # headroom for compiler-internal scratch

    b2_2d = b2.reshape(1, C_out)

    # ---------------- weight-resident fast path ----------------
    tm = max(8, (min(tile_m, _round_up(M, 8)) // 8) * 8)

    def resident_estimate(tm_):
        return (2 * (C_in * C_hidden + C_hidden * C_out) * op_itemsize   # W1/W2 (double-buffer safe)
                + 2 * tm_ * C_in * op_itemsize                            # x tile
                + 2 * tm_ * C_out * out_itemsize                          # out tile
                + 3 * tm_ * C_hidden * 4                                  # f32 hidden intermediate
                + 4 * (C_hidden + C_out) * 4)                             # biases

    use_resident = (not force_hidden_streaming) and resident_estimate(tm) <= tile_budget

    if use_resident:
        M_pad = _round_up(M, tm)
        if M_pad != M:
            x2d = jnp.pad(x2d, ((0, M_pad - M), (0, 0)))
        grid = (M_pad // tm,)
        b1_2d = b1.reshape(1, C_hidden)

        cost = pl.CostEstimate(
            flops=2 * M_pad * (C_in * C_hidden + C_hidden * C_out),
            transcendentals=M_pad * C_hidden,
            bytes_accessed=(x2d.size * op_itemsize
                            + (w1.size + w2.size) * op_itemsize          # weights read once
                            + (C_hidden + C_out) * 4
                            + M_pad * C_out * out_itemsize),
        )

        out2d = pl.pallas_call(
            functools.partial(_mlp_resident_kernel, approximate=gelu_approximate),
            out_shape=jax.ShapeDtypeStruct((M_pad, C_out), out_dtype),
            grid_spec=pltpu.PrefetchScalarGridSpec(
                num_scalar_prefetch=0,
                grid=grid,
                in_specs=[
                    pl.BlockSpec((tm, C_in), lambda i: (i, 0)),            # x row-tile
                    pl.BlockSpec((C_in, C_hidden), lambda i: (0, 0)),      # W1 (resident)
                    pl.BlockSpec((1, C_hidden), lambda i: (0, 0)),         # b1 (resident)
                    pl.BlockSpec((C_hidden, C_out), lambda i: (0, 0)),     # W2 (resident)
                    pl.BlockSpec((1, C_out), lambda i: (0, 0)),            # b2 (resident)
                ],
                out_specs=pl.BlockSpec((tm, C_out), lambda i: (i, 0)),
            ),
            compiler_params=pltpu.CompilerParams(
                dimension_semantics=("parallel",),
                vmem_limit_bytes=vmem_limit,
            ),
            cost_estimate=cost,
        )(x2d, w1, b1_2d, w2, b2_2d)

        return out2d[:M].reshape(B, N, C_out)

    # ---------------- hidden-streaming fallback ----------------
    # Larger row tile amortizes per-M-tile weight re-streaming and grid-step overhead.
    tm = max(8, (min(max(tile_m, 512), _round_up(M, 8)) // 8) * 8)

    H = C_hidden
    th = _pick_hidden_tile(C_hidden, tile_h)
    if th is None:
        # Rare fallback: C_hidden not a multiple of 128. Zero-padded hidden columns are
        # exact (GELU(0)=0 contributes nothing to fc2).
        H = _round_up(C_hidden, 128)
        w1 = jnp.pad(w1, ((0, 0), (0, H - C_hidden)))
        b1 = jnp.pad(b1, ((0, H - C_hidden),))
        w2 = jnp.pad(w2, ((0, H - C_hidden), (0, 0)))
        th = _pick_hidden_tile(H, tile_h)

    use_scratch = out_dtype != jnp.float32  # f32 output accumulates directly into o_ref

    def stream_estimate(tm_, th_):
        return (2 * tm_ * C_in * op_itemsize
                + 2 * C_in * th_ * op_itemsize
                + 2 * th_ * C_out * op_itemsize
                + 2 * H * 4
                + 2 * tm_ * C_out * out_itemsize
                + (tm_ * C_out * 4 if use_scratch else 0)
                + 3 * tm_ * th_ * 4)

    while stream_estimate(tm, th) > tile_budget:
        if th % 256 == 0 and th > 128:
            th //= 2                               # stays a multiple-of-128 divisor of H
        elif tm > 8:
            tm = max(8, (_round_up(tm // 2, 8)))
        else:
            break

    M_pad = _round_up(M, tm)
    if M_pad != M:
        x2d = jnp.pad(x2d, ((0, M_pad - M), (0, 0)))
    H_tiles = H // th
    grid = (M_pad // tm, H_tiles)

    b1_blk = b1.reshape(H_tiles, 1, th)   # fully resident; sliced per chunk in-kernel

    weight_bytes = (w1.size + w2.size) * op_itemsize
    cost = pl.CostEstimate(
        flops=2 * M_pad * (C_in * H + H * C_out),
        transcendentals=M_pad * H,
        # W1/W2 are re-streamed once per M-tile when the hidden dim is chunked.
        bytes_accessed=(x2d.size * op_itemsize + grid[0] * weight_bytes
                        + (H + C_out) * 4 + M_pad * C_out * out_itemsize),
    )

    scratch_shapes = [pltpu.VMEM((tm, C_out), jnp.float32)] if use_scratch else []

    # TODO(synk): on v5e consider pipeline_mode=pl.Buffered(3) for the W1/W2 specs to
    # hide the exposed weight DMA when streaming is unavoidable.
    out2d = pl.pallas_call(
        functools.partial(_mlp_stream_kernel, approximate=gelu_approximate),
        out_shape=jax.ShapeDtypeStruct((M_pad, C_out), out_dtype),
        grid_spec=pltpu.PrefetchScalarGridSpec(
            num_scalar_prefetch=0,
            grid=grid,
            in_specs=[
                pl.BlockSpec((tm, C_in), lambda i, k: (i, 0)),              # x row-tile
                pl.BlockSpec((C_in, th), lambda i, k: (0, k)),              # W1 hidden-chunk
                pl.BlockSpec((H_tiles, 1, th), lambda i, k: (0, 0, 0)),     # b1 (fully resident)
                pl.BlockSpec((th, C_out), lambda i, k: (k, 0)),             # W2 hidden-chunk
                pl.BlockSpec((1, C_out), lambda i, k: (0, 0)),              # b2
            ],
            out_specs=pl.BlockSpec((tm, C_out), lambda i, k: (i, 0)),
            scratch_shapes=scratch_shapes,
        ),
        compiler_params=pltpu.CompilerParams(
            dimension_semantics=("parallel", "arbitrary"),
            vmem_limit_bytes=vmem_limit,
        ),
        cost_estimate=cost,
    )(x2d, w1, b1_blk, w2, b2_2d)

    return out2d[:M].reshape(B, N, C_out)


def _init_params(key, in_features, hidden_features, out_features, dtype=jnp.float32):
    # Deterministic synthetic init (nn.Linear shapes; weights stored transposed).
    k1, k2, k3, k4 = jax.random.split(key, 4)
    w1 = jax.random.normal(k1, (in_features, hidden_features), dtype) * 0.02
    b1 = jax.random.normal(k2, (hidden_features,), dtype) * 0.02
    w2 = jax.random.normal(k3, (hidden_features, out_features), dtype) * 0.02
    b2 = jax.random.normal(k4, (out_features,), dtype) * 0.02
    return w1, b1, w2, b2


def _reference(x, w1, b1, w2, b2):
    B, N, C_in = x.shape
    h = x.reshape(-1, C_in) @ w1 + b1
    h = 0.5 * h * (1.0 + jax.lax.erf(h / jnp.sqrt(2.0)))
    return (h @ w2 + b2).reshape(B, N, w2.shape[1])


if __name__ == "__main__":
    key = jax.random.PRNGKey(0)

    # --- Check 1: weight-resident fast path, f32, exact-erf GELU. ---
    B, N = 2, 8
    in_features, hidden_features, out_features = 32, 64, 32
    kx, kp, kx2, kp2 = jax.random.split(key, 4)
    x = jax.random.normal(kx, (B, N, in_features), jnp.float32)
    w1, b1, w2, b2 = _init_params(kp, in_features, hidden_features, out_features)

    out = jax.block_until_ready(mlp_forward(x, w1, b1, w2, b2))
    ref = _reference(x, w1, b1, w2, b2)
    assert jnp.allclose(out, ref, atol=1e-5, rtol=1e-5)

    # --- Check 2: hidden-streaming fallback (M padding + multi-chunk accumulation). ---
    B2, N2 = 2, 13                      # M = 26 -> padded row tile
    in2, hid2, out2 = 32, 256, 32       # hidden streamed in 2 chunks of 128 (no weight padding)
    x2 = jax.random.normal(kx2, (B2, N2, in2), jnp.float32)
    p2 = _init_params(kp2, in2, hid2, out2)
    y2 = jax.block_until_ready(
        mlp_forward(x2, *p2, tile_h=128, force_hidden_streaming=True))
    ref2 = _reference(x2, *p2)
    assert jnp.allclose(y2, ref2, atol=1e-5, rtol=1e-5)

    # --- Check 3: bf16 operands (f32 accumulation) on the resident path. ---
    y3 = jax.block_until_ready(mlp_forward(x, w1, b1, w2, b2, compute_dtype=jnp.bfloat16))
    assert jnp.allclose(y3, ref, atol=2e-2, rtol=2e-2)

    # --- Check 4: tanh-approx GELU (EUP slot) lowers and stays close to erf reference. ---
    y4 = jax.block_until_ready(mlp_forward(x, w1, b1, w2, b2, gelu_approximate=True))
    assert jnp.allclose(y4, ref, atol=5e-3, rtol=5e-2)

    print("KERNEL_OK")
</pallas_src>

<mosaic_0001>
module attributes {stable_mosaic.version = 11 : i64} {
  func.func @_mlp_resident_kernel(%arg0: i32, %arg1: memref<16x32xf32, #tpu.memory_space<vmem>>, %arg2: memref<32x64xf32, #tpu.memory_space<vmem>>, %arg3: memref<1x64xf32, #tpu.memory_space<vmem>>, %arg4: memref<64x32xf32, #tpu.memory_space<vmem>>, %arg5: memref<1x32xf32, #tpu.memory_space<vmem>>, %arg6: memref<16x32xf32, #tpu.memory_space<vmem>>) attributes {dimension_semantics = [#tpu.dimension_semantics<parallel>], iteration_bounds = array<i64: 1>, scalar_prefetch = 0 : i64, scratch_operands = 0 : i64, tpu.core_type = #tpu.core_type<tc>, window_params = [{transform_indices = @transform_0, window_bounds = array<i64: 16, 32>}, {pipeline_mode = #tpu.pipeline_mode<synchronous>, transform_indices = @transform_1, window_bounds = array<i64: 32, 64>}, {pipeline_mode = #tpu.pipeline_mode<synchronous>, transform_indices = @transform_2, window_bounds = array<i64: 1, 64>}, {pipeline_mode = #tpu.pipeline_mode<synchronous>, transform_indices = @transform_3, window_bounds = array<i64: 64, 32>}, {pipeline_mode = #tpu.pipeline_mode<synchronous>, transform_indices = @transform_4, window_bounds = array<i64: 1, 32>}, {transform_indices = @transform_5, window_bounds = array<i64: 16, 32>}]} {
    %c0 = arith.constant 0 : index
    %c0_0 = arith.constant 0 : index
    %0 = vector.load %arg1[%c0, %c0_0] : memref<16x32xf32, #tpu.memory_space<vmem>>, vector<16x32xf32>
    %c0_1 = arith.constant 0 : index
    %c0_2 = arith.constant 0 : index
    %1 = vector.load %arg2[%c0_1, %c0_2] : memref<32x64xf32, #tpu.memory_space<vmem>>, vector<32x64xf32>
    %cst = arith.constant dense<0.000000e+00> : vector<16x64xf32>
    %2 = tpu.matmul %0, %1, %cst {dimension_numbers = #tpu.dot_dimension_numbers<[1], [0], [0], [1], [0, 0, 1, 1], [], []>} : vector<16x32xf32>, vector<32x64xf32>, vector<16x64xf32> -> vector<16x64xf32>
    %c0_3 = arith.constant 0 : index
    %c0_4 = arith.constant 0 : index
    %3 = vector.load %arg3[%c0_3, %c0_4] : memref<1x64xf32, #tpu.memory_space<vmem>>, vector<1x64xf32>
    %4 = vector.broadcast %3 : vector<1x64xf32> to vector<16x64xf32>
    %5 = arith.addf %2, %4 : vector<16x64xf32>
    %cst_5 = arith.constant 5.000000e-01 : f32
    %6 = vector.broadcast %cst_5 : f32 to vector<16x64xf32>
    %7 = arith.mulf %6, %5 : vector<16x64xf32>
    %cst_6 = arith.constant 0.707106769 : f32
    %8 = vector.broadcast %cst_6 : f32 to vector<16x64xf32>
    %9 = arith.mulf %5, %8 : vector<16x64xf32>
    %10 = math.erf %9 : vector<16x64xf32>
    %cst_7 = arith.constant 1.000000e+00 : f32
    %11 = vector.broadcast %cst_7 : f32 to vector<16x64xf32>
    %12 = arith.addf %11, %10 : vector<16x64xf32>
    %13 = arith.mulf %7, %12 : vector<16x64xf32>
    %c0_8 = arith.constant 0 : index
    %c0_9 = arith.constant 0 : index
    %14 = vector.load %arg4[%c0_8, %c0_9] : memref<64x32xf32, #tpu.memory_space<vmem>>, vector<64x32xf32>
    %cst_10 = arith.constant dense<0.000000e+00> : vector<16x32xf32>
    %15 = tpu.matmul %13, %14, %cst_10 {dimension_numbers = #tpu.dot_dimension_numbers<[1], [0], [0], [1], [0, 0, 1, 1], [], []>} : vector<16x64xf32>, vector<64x32xf32>, vector<16x32xf32> -> vector<16x32xf32>
    %c0_11 = arith.constant 0 : index
    %c0_12 = arith.constant 0 : index
    %16 = vector.load %arg5[%c0_11, %c0_12] : memref<1x32xf32, #tpu.memory_space<vmem>>, vector<1x32xf32>
    %17 = vector.broadcast %16 : vector<1x32xf32> to vector<16x32xf32>
    %18 = arith.addf %15, %17 : vector<16x32xf32>
    %c0_13 = arith.constant 0 : index
    %c0_14 = arith.constant 0 : index
    %19 = vector.load %arg6[%c0_13, %c0_14] : memref<16x32xf32, #tpu.memory_space<vmem>>, vector<16x32xf32>
    tpu.vector_store %arg6[%c0_13, %c0_14], %18 {strides = array<i32>} : memref<16x32xf32, #tpu.memory_space<vmem>>, vector<16x32xf32>,
    return
  }
  func.func @transform_0(%arg0: i32) -> (i32, i32) {
    %c0_i32 = arith.constant 0 : i32
    %c0_i32_0 = arith.constant 0 : i32
    return %arg0, %c0_i32 : i32, i32
  }
  func.func @transform_1(%arg0: i32) -> (i32, i32) {
    %c0_i32 = arith.constant 0 : i32
    %c0_i32_0 = arith.constant 0 : i32
    %c0_i32_1 = arith.constant 0 : i32
    return %c0_i32, %c0_i32_0 : i32, i32
  }
  func.func @transform_2(%arg0: i32) -> (i32, i32) {
    %c0_i32 = arith.constant 0 : i32
    %c0_i32_0 = arith.constant 0 : i32
    %c0_i32_1 = arith.constant 0 : i32
    return %c0_i32, %c0_i32_0 : i32, i32
  }
  func.func @transform_3(%arg0: i32) -> (i32, i32) {
    %c0_i32 = arith.constant 0 : i32
    %c0_i32_0 = arith.constant 0 : i32
    %c0_i32_1 = arith.constant 0 : i32
    return %c0_i32, %c0_i32_0 : i32, i32
  }
  func.func @transform_4(%arg0: i32) -> (i32, i32) {
    %c0_i32 = arith.constant 0 : i32
    %c0_i32_0 = arith.constant 0 : i32
    %c0_i32_1 = arith.constant 0 : i32
    return %c0_i32, %c0_i32_0 : i32, i32
  }
  func.func @transform_5(%arg0: i32) -> (i32, i32) {
    %c0_i32 = arith.constant 0 : i32
    %c0_i32_0 = arith.constant 0 : i32
    return %arg0, %c0_i32 : i32, i32
  }
}

</mosaic_0001>

<bundles_post_ra>
// kernel: mlp_forward.1
= control target key start
LH: loop header
LB: loop body
LE: loop exit
PB: predicated region body
PF: predicated region fallthrough
CT: control target
= control target key end

     0   :  { %vm34_vm0 = vcmask 261120   ;;  %s410_s0 = inlined_call_operand.vmem [shape: f32[16,32], index: 0, kind: input, shape index: {}]   ;;  %s411_s1 = inlined_call_operand.vmem [shape: f32[32,64], index: 1, kind: input, shape index: {}]   ;;  %s412_s2 = inlined_call_operand.vmem [shape: f32[1,64], index: 2, kind: input, shape index: {}]   ;;  %s413_s3 = inlined_call_operand.vmem [shape: f32[64,32], index: 3, kind: input, shape index: {}]   ;;  %s414_s4 = inlined_call_operand.vmem [shape: f32[1,32], index: 4, kind: input, shape index: {}]   ;;  %s415_s5 = inlined_call_operand.hbm [shape: f32[16,32], index: 5, kind: output, shape index: {}]  }
   0x1   :  { %v26_v0 = vld [vmem:[%s411_s1 + $0x18] sm:$0xff]  ;;  %v25_v1 = vld [vmem:[%s411_s1 + $0x10] sm:$0xff]  ;;  %v21_v2 = vld [vmem:[%s410_s0] sm:$0xff] }
   0x2   :  { %263 = vmatprep.subr.mxu0 %v26_v0  ;;  %v24_v3 = vld [vmem:[%s411_s1 + $0x8] sm:$0xff]  ;;  %271 = vmatprep.mubr.msk.f32.mxu0 %vm34_vm0, %v21_v2 }
   0x3   :  { %264 = vmatpush3.msra.mxu0 %v26_v0 }
   0x4   :  { %10 = vsyncpa [#allocation3], 0  ;;  %265 = vmatprep.subr.mxu0 %v25_v1  ;;  %v23_v4 = vld [vmem:[%s411_s1] sm:$0xff]  ;;  %v22_v5 = vld [vmem:[%s410_s0 + $0x8] sm:$0xff]  ;;  %vm141_vm1 = vcmask 523264   ;;  %s322_s21 = smov [#allocation2]  }
   0x5   :  { %266 = vmatpush3.msra.mxu0 %v25_v1  ;;  %v133_v6 = vld [vmem:[%s413_s3 + $0x38] sm:$0xff]  ;;  %v132_v7 = vld [vmem:[%s413_s3 + $0x30] sm:$0xff]  ;;  %v131_v8 = vld [vmem:[%s413_s3 + $0x28] sm:$0xff]  ;;  %s230_s22 = sshll.u32 %s322_s21, 4  ;;  %s231_s22 = int_to_ptr.vmem [resolvable:$true] %s230_s22 }
   0x6   :  { %267 = vmatprep.subr.mxu0 %v24_v3  ;;  %274 = vmatprep.subr.mxu1 %v133_v6  ;;  %v130_v9 = vld [vmem:[%s413_s3 + $0x20] sm:$0xff]  ;;  %v129_v10 = vld [vmem:[%s413_s3 + $0x18] sm:$0xff]  ;;  %v128_v11 = vld [vmem:[%s413_s3 + $0x10] sm:$0xff]  ;;  %s300_s23 = scalar_lea.vmem %s231_s22, 256  ;;  %p305_p1 = scmp.lt.s32.totalorder %s231_s22, %s231_s22 }
   0x7   :  { %268 = vmatpush3.msra.mxu0 %v24_v3  ;;  %275 = vmatpush3.msra.mxu1 %v133_v6  ;;  %v127_v12 = vld [vmem:[%s413_s3 + $0x8] sm:$0xff]  ;;  %v126_v13 = vld [vmem:[%s413_s3] sm:$0xff]  ;;  %p301_p0 = scmp.ne.s32.totalorder %s231_s22, %s300_s23  ;;  %p306_p2 = scmp.lt.s32.totalorder %s300_s23, %s300_s23 }
   0x8   :  { %269 = vmatprep.subr.mxu0 %v23_v4  ;;  %276 = vmatprep.subr.mxu1 %v132_v7  ;;  %v241_v14 = vld [vmem:[%s412_s2] ss:$0 sm:$0xff] }
   0x9   :  { %270 = vmatpush3.msra.mxu0 %v23_v4  ;;  %277 = vmatpush3.msra.mxu1 %v132_v7  ;;  %v244_v29 = vld [vmem:[%s414_s4] ss:$0 sm:$0xff]  ;;  %p307_p3 = por %p306_p2, %p305_p1 }
   0xa   :  { %272 = vmatmul.mubr.msk.f32.vlgmr.msra.gmra.mxu0 %vm34_vm0, %v22_v5  ;;  %278 = vmatprep.subr.mxu1 %v131_v8 }
   0xb   :  { %279 = vmatpush3.msra.mxu1 %v131_v8  ;;  %p308_p4 = pnand %p307_p3, %p301_p0 }
   0xc   :  { %280 = vmatprep.subr.mxu1 %v130_v9 }
   0xd   :  { %281 = vmatpush3.msra.mxu1 %v130_v9 }
   0xe   :  { %282 = vmatprep.subr.mxu1 %v129_v10 }
   0xf   :  { %283 = vmatpush3.msra.mxu1 %v129_v10 }
  0x10   :  { %284 = vmatprep.subr.mxu1 %v128_v11 }
  0x11   :  { %285 = vmatpush3.msra.mxu1 %v128_v11 }
  0x12   :  { %286 = vmatprep.subr.mxu1 %v127_v12 }
  0x13   :  { %287 = vmatpush3.msra.mxu1 %v127_v12 }
  0x14   :  { %288 = vmatprep.subr.mxu1 %v126_v13 }
  0x15   :  { %289 = vmatpush3.msra.mxu1 %v126_v13 }
  0xca   :  { %v273_v15 = vpop.f32.mrf.mxu0 }
  0xcb   :  { %v113_v16 = vadd.f32 %v273_v15, %v241_v14 }
  0xcc   :  { %v107_v17 = vpop.f32.mrf.mxu0 }
  0xcd   :  { %v119_v18 = vmul.f32 0.70710677, %v113_v16  ;;  %v108_v19 = vadd.f32 %v241_v14, %v107_v17  ;;  %v117_v26 = vmul.f32 0.5, %v113_v16 }
  0xcf   :  { %296 = verf.f32 %v119_v18  ;;  %v118_v20 = vmul.f32 0.70710677, %v108_v19  ;;  %v116_v24 = vmul.f32 0.5, %v108_v19 }
  0xd1   :  { %298 = verf.f32 %v118_v20 }
  0xdc   :  { %v297_v21 = vpop.eup %296 }
  0xdd   :  { %v123_v23 = vadd.f32 1.0, %v297_v21 }
  0xde   :  { %v299_v22 = vpop.eup %298 }
  0xdf   :  { %v122_v25 = vadd.f32 1.0, %v299_v22  ;;  %v125_v28 = vmul.f32 %v123_v23, %v117_v26 }
  0xe1   :  { %v124_v27 = vmul.f32 %v122_v25, %v116_v24 }
  0xe3   :  { %290 = vmatprep.mubr.msk.f32.mxu1 %vm141_vm1, %v124_v27 }
  0xe4   :  { %291 = vmatmul.mubr.msk.f32.vlgmr.msra.gmra.mxu1 %vm141_vm1, %v125_v28 }
 0x1a4   :  { %v292_v30 = vpop.f32.mrf.mxu1 }
 0x1a5   :  { %v220_v31 = vadd.f32 %v292_v30, %v244_v29 }
 0x1a6   :  { %v214_v32 = vpop.f32.mrf.mxu1 }
 0x1a7   :  { %224 = vst.msk [vmem:[#allocation2 + $0x8] sm:$0xff] %vm34_vm0, %v220_v31  ;;  %v215_v33 = vadd.f32 %v244_v29, %v214_v32 }
 0x1a9   :  { %223 = vst.msk [vmem:[#allocation2] sm:$0xff] %vm34_vm0, %v215_v33 }
 0x1aa   :  { %311 = shalt.err (!%p308_p4)
}
 0x1ab   :  { %s323_s24 = smov 128   ;;  %s324_s4 = smov 8  }
 0x1ac   :  { %236 = dma.vmem_to_hbm [thread:$0]  %s231_s22, 256, %s415_s5, [#allocation3], %s323_s24, %s323_s24, %s324_s4  }
 0x1ad   :  { %320 = dma.done.wait [#allocation3], 256  }
 0x1ae   :  { %321 = vsyncadd [#allocation3], 4294967040 }
 0x1af   :  { %240 = vsyncpa [#allocation3], 1 }

</bundles_post_ra>
